<compile_context>
chip_gen: v5e
topology: v5e:2x2
jax: 0.10.0
libtpu: 0.0.40
codegen_flags: <defaults>
</compile_context>

<pallas_src>
import functools

import jax
import jax.numpy as jnp
from jax import lax
from jax.experimental import pallas as pl
from jax.experimental.pallas import tpu as pltpu


# Per-input-buffer VMEM budget (lane-padded footprint) for one (tile_r, tile_l)
# block.  8 MiB x 2 (double buffering) + tiny output/accumulator blocks stays
# well under the explicit 40 MiB scoped-VMEM limit requested below.
_TILE_BYTES = 8 * 1024 * 1024
_VMEM_LIMIT_BYTES = 40 * 1024 * 1024


def _round_up(x: int, m: int) -> int:
    return ((x + m - 1) // m) * m


# ----------------------- kernels: single-L-block path -----------------------
def _avg_single_kernel(x_ref, o_ref, *, inv_len: float):
    s = jnp.sum(x_ref[...].astype(jnp.float32), axis=-1, keepdims=True)
    o_ref[...] = (s * jnp.float32(inv_len)).astype(o_ref.dtype)


def _max_single_kernel(x_ref, o_ref):
    # max is a selection -> exact in the native dtype (bf16 / ints included).
    o_ref[...] = jnp.max(x_ref[...], axis=-1, keepdims=True)


# ------------------------ kernels: tiled-L (long L) -------------------------
def _avg_multi_kernel(x_ref, o_ref, acc_ref, *, inv_len: float, tile_l: int, rem: int):
    j = pl.program_id(1)

    @pl.when(j == 0)
    def _():
        acc_ref[...] = jnp.zeros_like(acc_ref)

    x = x_ref[...].astype(jnp.float32)
    if rem:  # static: L % tile_l != 0 -> mask the ragged tail block's dead lanes
        num_valid = jnp.where(j == pl.num_programs(1) - 1, rem, tile_l)
        lanes = lax.broadcasted_iota(jnp.int32, x.shape, 1)
        x = jnp.where(lanes < num_valid, x, 0.0)
    acc_ref[...] += jnp.sum(x, axis=-1, keepdims=True)

    @pl.when(j == pl.num_programs(1) - 1)
    def _():
        o_ref[...] = (acc_ref[...] * jnp.float32(inv_len)).astype(o_ref.dtype)


def _max_multi_kernel(x_ref, o_ref, *, tile_l: int, rem: int, neg_identity):
    # Accumulate directly into the resident output block (dtype-native, exact).
    j = pl.program_id(1)

    @pl.when(j == 0)
    def _():
        o_ref[...] = jnp.full(o_ref.shape, neg_identity, o_ref.dtype)

    x = x_ref[...]
    if rem:
        num_valid = jnp.where(j == pl.num_programs(1) - 1, rem, tile_l)
        lanes = lax.broadcasted_iota(jnp.int32, x.shape, 1)
        x = jnp.where(lanes < num_valid, x, neg_identity)
    o_ref[...] = jnp.maximum(o_ref[...], jnp.max(x, axis=-1, keepdims=True))


# --------------------------------- wrapper -----------------------------------
def pallas_adaptive_pool(x: jax.Array, func=None, *, tile_bytes: int = _TILE_BYTES) -> jax.Array:
    """AdaptivePool forward on an (N, C, L) tensor.

    func='avg' -> (N, C, 1) mean over L;  func='max' -> (N, C, 1) max over L;
    func=None  -> identity (x returned as-is).
    `tile_bytes` is the per-input-buffer VMEM budget (exposed for testing).
    """
    if func is None:
        return x  # nn.Identity: no HBM round-trip.
    if func not in ("avg", "max"):
        raise NotImplementedError(f"Unsupported pooling function: {func!r}")

    N, C, L = x.shape
    dtype = x.dtype
    if func == "avg" and not jnp.issubdtype(dtype, jnp.floating):
        raise TypeError("AdaptivePool(func='avg') requires a floating dtype "
                        "(torch.nn.AdaptiveAvgPool1d does not accept integers).")

    rows = N * C
    itemsize = jnp.dtype(dtype).itemsize
    sub = {4: 8, 2: 16, 1: 32}.get(itemsize, 8)   # packed-sublane multiple
    x2d = x.reshape(rows, L)

    def lane_pad(c: int) -> int:
        return _round_up(c, 128)

    # ---- L (reduction) tiling: full L if a minimal-height block fits budget ----
    if lane_pad(L) * sub * itemsize <= tile_bytes:
        tile_l = L
    else:
        tile_l = max(128, (tile_bytes // (sub * itemsize)) // 128 * 128)
    grid_l = pl.cdiv(L, tile_l)
    rem_l = L % tile_l if grid_l > 1 else 0

    # ---- row ("parallel") tiling, budgeted on the lane-padded VMEM footprint ----
    row_bytes = lane_pad(tile_l) * itemsize
    tile_r = max(sub, (tile_bytes // row_bytes) // sub * sub)
    if rows <= sub:
        tile_r = rows                                   # full-dim block
    else:
        tile_r = min(tile_r, rows)
        # Ensure >= 2 row blocks so both v7x TensorCores get work.
        tile_r = min(tile_r, _round_up(pl.cdiv(rows, 2), sub))
        tile_r = max(sub, (tile_r // sub) * sub)
    grid_r = pl.cdiv(rows, tile_r)

    cost = pl.CostEstimate(
        flops=rows * L,
        transcendentals=0,
        bytes_accessed=rows * L * itemsize + rows * itemsize,
    )

    if grid_l == 1:
        # Common case: whole L in one block -> direct reduce, no scratch/pl.when.
        if func == "avg":
            kernel = functools.partial(_avg_single_kernel, inv_len=1.0 / float(L))
        else:
            kernel = _max_single_kernel
        grid_spec = pltpu.PrefetchScalarGridSpec(
            num_scalar_prefetch=0,
            grid=(grid_r,),
            in_specs=[pl.BlockSpec((tile_r, tile_l), lambda i: (i, 0))],
            out_specs=pl.BlockSpec((tile_r, 1), lambda i: (i, 0)),
        )
        dim_sem = ("parallel",)
    else:
        if func == "avg":
            kernel = functools.partial(_avg_multi_kernel, inv_len=1.0 / float(L),
                                       tile_l=tile_l, rem=rem_l)
            scratch = [pltpu.VMEM((tile_r, 1), jnp.float32)]
        else:
            neg = (float("-inf") if jnp.issubdtype(dtype, jnp.floating)
                   else int(jnp.iinfo(dtype).min))
            kernel = functools.partial(_max_multi_kernel, tile_l=tile_l,
                                       rem=rem_l, neg_identity=neg)
            scratch = []  # max accumulates directly into the resident out block
        grid_spec = pltpu.PrefetchScalarGridSpec(
            num_scalar_prefetch=0,
            grid=(grid_r, grid_l),
            in_specs=[pl.BlockSpec((tile_r, tile_l), lambda i, j: (i, j))],
            out_specs=pl.BlockSpec((tile_r, 1), lambda i, j: (i, 0)),
            scratch_shapes=scratch,
        )
        dim_sem = ("parallel", "arbitrary")

    out2d = pl.pallas_call(
        kernel,
        out_shape=jax.ShapeDtypeStruct((rows, 1), dtype),
        grid_spec=grid_spec,
        compiler_params=pltpu.CompilerParams(
            dimension_semantics=dim_sem,
            vmem_limit_bytes=_VMEM_LIMIT_BYTES,
        ),
        cost_estimate=cost,
    )(x2d)

    return out2d.reshape(N, C, 1)


if __name__ == "__main__":
    key = jax.random.PRNGKey(0)
    k1, k2, k3 = jax.random.split(key, 3)

    # Case 1: func=None -> nn.Identity (module default).
    x_id = jax.random.normal(k1, (2, 4, 16), dtype=jnp.float32)
    y_id = jax.block_until_ready(pallas_adaptive_pool(x_id, func=None))
    assert y_id.shape == (2, 4, 16)
    assert jnp.array_equal(y_id, x_id), "identity path must return input unchanged"

    # Case 2: single-L-block fast path (f32), lane-dense L and tiny L.
    for shape in [(2, 4, 512), (2, 4, 16)]:
        x = jax.random.normal(k2, shape, dtype=jnp.float32)
        y_avg = jax.block_until_ready(pallas_adaptive_pool(x, func="avg"))
        y_max = jax.block_until_ready(pallas_adaptive_pool(x, func="max"))
        assert y_avg.shape == shape[:2] + (1,)
        assert jnp.allclose(y_avg, jnp.mean(x, axis=-1, keepdims=True),
                            rtol=1e-5, atol=1e-6), f"avg mismatch {shape}"
        assert jnp.array_equal(y_max, jnp.max(x, axis=-1, keepdims=True)), \
            f"max mismatch {shape}"

    # Case 3: tiled-L path with ragged row- and L-tails (tiny tile budget forces
    # multi-block reduction + in-kernel tail masking on a small input).
    x3 = jax.random.normal(k3, (3, 5, 300), dtype=jnp.float32)
    y3_avg = jax.block_until_ready(pallas_adaptive_pool(x3, func="avg", tile_bytes=8192))
    y3_max = jax.block_until_ready(pallas_adaptive_pool(x3, func="max", tile_bytes=8192))
    assert jnp.allclose(y3_avg, jnp.mean(x3, axis=-1, keepdims=True),
                        rtol=1e-5, atol=1e-6), "tiled avg mismatch"
    assert jnp.array_equal(y3_max, jnp.max(x3, axis=-1, keepdims=True)), "tiled max mismatch"

    # Case 4: bf16 max (dtype-native, exact).
    xb = jax.random.normal(k1, (2, 4, 256), dtype=jnp.bfloat16)
    yb = jax.block_until_ready(pallas_adaptive_pool(xb, func="max"))
    assert jnp.array_equal(yb, jnp.max(xb, axis=-1, keepdims=True)), "bf16 max mismatch"

    print("KERNEL_OK")
</pallas_src>

<mosaic_0001>
module attributes {stable_mosaic.version = 11 : i64} {
  func.func @_avg_single_kernel(%arg0: i32, %arg1: memref<8x512xf32, #tpu.memory_space<vmem>>, %arg2: memref<8x1xf32, #tpu.memory_space<vmem>>) attributes {dimension_semantics = [#tpu.dimension_semantics<parallel>], iteration_bounds = array<i64: 1>, scalar_prefetch = 0 : i64, scratch_operands = 0 : i64, tpu.core_type = #tpu.core_type<tc>, window_params = [{transform_indices = @transform_0, window_bounds = array<i64: 8, 512>}, {transform_indices = @transform_1, window_bounds = array<i64: 8, 1>}]} {
    %c0 = arith.constant 0 : index
    %c0_0 = arith.constant 0 : index
    %0 = vector.load %arg1[%c0, %c0_0] : memref<8x512xf32, #tpu.memory_space<vmem>>, vector<8x512xf32>
    %cst = arith.constant dense<0.000000e+00> : vector<8xf32>
    %1 = vector.multi_reduction <add>, %0, %cst [1] : vector<8x512xf32> to vector<8xf32>
    %2 = vector.shape_cast %1 : vector<8xf32> to vector<8x1xf32>
    %cst_1 = arith.constant 0.001953125 : f32
    %3 = vector.broadcast %cst_1 : f32 to vector<8x1xf32>
    %4 = arith.mulf %2, %3 : vector<8x1xf32>
    %c0_2 = arith.constant 0 : index
    %c0_3 = arith.constant 0 : index
    %5 = vector.load %arg2[%c0_2, %c0_3] : memref<8x1xf32, #tpu.memory_space<vmem>>, vector<8x1xf32>
    tpu.vector_store %arg2[%c0_2, %c0_3], %4 {strides = array<i32>} : memref<8x1xf32, #tpu.memory_space<vmem>>, vector<8x1xf32>,
    return
  }
  func.func @transform_0(%arg0: i32) -> (i32, i32) {
    %c0_i32 = arith.constant 0 : i32
    %c0_i32_0 = arith.constant 0 : i32
    return %arg0, %c0_i32 : i32, i32
  }
  func.func @transform_1(%arg0: i32) -> (i32, i32) {
    %c0_i32 = arith.constant 0 : i32
    %c0_i32_0 = arith.constant 0 : i32
    return %arg0, %c0_i32 : i32, i32
  }
}

</mosaic_0001>

<bundles_post_ra>
// kernel: tpu_custom_call.1
= control target key start
LH: loop header
LB: loop body
LE: loop exit
PB: predicated region body
PF: predicated region fallthrough
CT: control target
= control target key end

     0   :  { %6 = vsyncpa [#allocation3], 0  ;;  %s66_s9 = smov [#allocation2]   ;;  %s83_s0 = inlined_call_operand.hbm [shape: f32[8,512], index: 0, kind: input, shape index: {}]   ;;  %s84_s1 = inlined_call_operand.vmem [shape: f32[8,1], index: 1, kind: output, shape index: {}]  }
   0x1   :  { %s12_s8 = sshll.u32 %s83_s0, 4  ;;  %s14_s10 = sshll.u32 %s66_s9, 4  ;;  %s13_s8 = int_to_ptr.hbm [resolvable:$true] %s12_s8  ;;  %s15_s10 = int_to_ptr.vmem [resolvable:$true] %s14_s10 }
   0x2   :  { %17 = dma.hbm_to_vmem [thread:$0]  %s13_s8, 512, %s15_s10, [#allocation3]  }
   0x3   :  { %64 = dma.done.wait [#allocation3], 512  }
   0x4   :  { %65 = vsyncadd [#allocation3], 4294966784  ;;  %v22_v0 = vld [vmem:[#allocation2] sm:$0xff]  ;;  %v23_v1 = vld [vmem:[#allocation2 + $0x8] sm:$0xff]  ;;  %vm32_vm0 = vcmask 7168  }
   0x5   :  { %v24_v2 = vld [vmem:[#allocation2 + $0x10] sm:$0xff]  ;;  %v26_v3 = vadd.f32 %v23_v1, %v22_v0  ;;  %v25_v4 = vld [vmem:[#allocation2 + $0x18] sm:$0xff] }
   0x7   :  { %v27_v5 = vadd.f32 %v26_v3, %v24_v2 }
   0x9   :  { %v28_v6 = vadd.f32 %v27_v5, %v25_v4 }
   0xb   :  { %29 = vadd.xlane.f32.xlu0 %v28_v6 }
  0x7e   :  { %v30_v7 = vpop.xlane.xlu0 %29 }
  0x7f   :  { %v31_v8 = vmul.f32 0.001953125, %v30_v7 }
  0x81   :  { %33 = vst.msk [vmem:[%s84_s1] sm:$0xff] %vm32_vm0, %v31_v8 }
  0x82   :  { %38 = vsyncpa [#allocation3], 1 }

</bundles_post_ra>
